<compile_context>
chip_gen: v7x
topology: tpu7x:2x2x1
jax: 0.10.0
libtpu: 0.0.40
codegen_flags: <defaults>
</compile_context>

<pallas_src>
import math
from functools import partial

import jax
import jax.numpy as jnp
from jax.experimental import pallas as pl
from jax.experimental.pallas import tpu as pltpu


# ----------------------------------------------------------------------------
# Fused Pallas kernel: QKV projections + (batch-axis) attention + out projection
# ----------------------------------------------------------------------------
def _mha_fused_kernel(q_ref, k_ref, v_ref,
                      wq_ref, bq_ref, wk_ref, bk_ref, wv_ref, bv_ref,
                      wo_ref, bo_ref,
                      o_ref, w_ref, *, num_heads):
    """Fused MHA forward.

    q_ref/k_ref/v_ref: (B, L, E) batch-first inputs.
    w*_ref: (E, E) nn.Linear weights (out, in).  b*_ref: (1, E) biases.
    o_ref:  (B, L, E) attention output (batch-first, after out_proj).
    w_ref:  (B, B, L, H); w_ref[b, c, l, h] = softmax weight of key-batch c for
            query-batch b at (seq l, head h)  (the reference's softmax axis).
    """
    B, L, E = q_ref.shape
    H = num_heads
    D = E // H
    scale = 1.0 / math.sqrt(D)

    wq = wq_ref[...]
    wk = wk_ref[...]
    wv = wv_ref[...]
    wo = wo_ref[...]
    bq = bq_ref[...]
    bk = bk_ref[...]
    bv = bv_ref[...]
    bo = bo_ref[...]

    # Block-diagonal head matrix: r_mat[e, h] = 1 iff lane e belongs to head h.
    #   (x * y) @ r_mat      -> per-head contraction over D lanes  (scores)
    #   w (L,H) contracted with r_mat's H axis -> per-head broadcast to E lanes
    # Both run on the MXU, so the head split needs no reshape/transpose.
    col = jax.lax.broadcasted_iota(jnp.int32, (E, H), 0)
    lower = jax.lax.broadcasted_iota(jnp.int32, (E, H), 1) * D
    r_mat = jnp.logical_and(col >= lower, col < lower + D).astype(jnp.float32)

    def proj(x, w, b):  # x: (L, E_in), w: (E_out, E_in), b: (1, E_out)
        y = jax.lax.dot_general(x, w, (((1,), (1,)), ((), ())),
                                preferred_element_type=jnp.float32)
        return y + b

    # Per-batch projections (B is tiny & static -> unrolled at trace time).
    qs = [proj(q_ref[b], wq, bq) for b in range(B)]  # each (L, E), f32
    ks = [proj(k_ref[c], wk, bk) for c in range(B)]
    vs = [proj(v_ref[c], wv, bv) for c in range(B)]

    # scores[b][c][l, h] = (1/sqrt(D)) * sum_{d in head h} q_b[l, d] * k_c[l, d]
    scores = [[jnp.dot(qs[b] * ks[c], r_mat,
                       preferred_element_type=jnp.float32) * scale
               for c in range(B)] for b in range(B)]

    for b in range(B):
        row = scores[b]  # B arrays of (L, H); softmax over this list (axis c)
        m = row[0]
        for c in range(1, B):
            m = jnp.maximum(m, row[c])
        es = [jnp.exp(row[c] - m) for c in range(B)]
        denom = es[0]
        for c in range(1, B):
            denom = denom + es[c]
        # TODO(synk): flip approx=True at production sizes (EUP offload); exact
        # here to hold the 1e-5 correctness tolerance in the self-test.
        inv = pl.reciprocal(denom, approx=False)
        ws = [es[c] * inv for c in range(B)]  # (L, H) each

        # attn_b[l, h*D+d] = sum_c ws[c][l, h] * v_c[l, h*D+d]
        attn_b = None
        for c in range(B):
            w_bcast = jax.lax.dot_general(  # (L, H) x (E, H) -> (L, E)
                ws[c], r_mat, (((1,), (1,)), ((), ())),
                preferred_element_type=jnp.float32)
            term = w_bcast * vs[c]
            attn_b = term if attn_b is None else attn_b + term

        # Output projection written straight to the output block.
        o_ref[b] = proj(attn_b, wo, bo).astype(o_ref.dtype)
        for c in range(B):
            w_ref[b, c] = ws[c].astype(w_ref.dtype)


# ----------------------------------------------------------------------------
# Module forward (everything compute-heavy lives in the single Pallas call)
# ----------------------------------------------------------------------------
def multi_head_attention(query, key, value, params, num_heads):
    """query: (Lq, B, E), key/value: (Lk, B, E).
    Returns ((Lq, B, E), (Lq, H, B, B)) exactly like the PyTorch module."""
    wq, bq, wk, bk, wv, bv, wo, bo = params
    Lq, B, E = query.shape
    Lk = key.shape[0]
    H = num_heads
    # The reference's head-split reshape silently requires Lk == Lq.
    assert Lk == Lq and E % H == 0

    # Mirror the module's .transpose(0, 1): batch-first (B, L, E).
    q_bf = jnp.transpose(query, (1, 0, 2))
    k_bf = jnp.transpose(key, (1, 0, 2))
    v_bf = jnp.transpose(value, (1, 0, 2))

    out_bf, w_bf = pl.pallas_call(
        partial(_mha_fused_kernel, num_heads=H),
        out_shape=(
            jax.ShapeDtypeStruct((B, Lq, E), query.dtype),
            jax.ShapeDtypeStruct((B, B, Lq, H), jnp.float32),
        ),
        compiler_params=pltpu.CompilerParams(vmem_limit_bytes=32 * 1024 * 1024),
    )(q_bf, k_bf, v_bf,
      wq, bq.reshape(1, E), wk, bk.reshape(1, E),
      wv, bv.reshape(1, E), wo, bo.reshape(1, E))

    out = jnp.transpose(out_bf, (1, 0, 2))        # (Lq, B, E)
    attn_w = jnp.transpose(w_bf, (2, 3, 0, 1))    # (Lq, H, B, B)
    return out, attn_w


# ----------------------------------------------------------------------------
# Pure-JAX reference (faithful to the PyTorch module) for correctness check
# ----------------------------------------------------------------------------
def mha_reference(query, key, value, params, num_heads):
    wq, bq, wk, bk, wv, bv, wo, bo = params
    Lq, B, E = query.shape
    H = num_heads
    D = E // H
    q_in = jnp.transpose(query, (1, 0, 2))
    k_in = jnp.transpose(key, (1, 0, 2))
    v_in = jnp.transpose(value, (1, 0, 2))
    q = q_in @ wq.T + bq
    k = k_in @ wk.T + bk
    v = v_in @ wv.T + bv
    qh = jnp.transpose(q.reshape(B, Lq * H, D), (1, 0, 2)) / math.sqrt(D)
    kh = jnp.transpose(k.reshape(B, -1, D), (1, 0, 2))
    vh = jnp.transpose(v.reshape(B, -1, D), (1, 0, 2))
    scores = jnp.einsum("pbd,pcd->pbc", qh, kh)
    w = jax.nn.softmax(scores, axis=-1)
    o = jnp.einsum("pbc,pcd->pbd", w, vh)
    out = jnp.transpose(o, (1, 0, 2)).reshape(B, Lq, E)
    out = out @ wo.T + bo
    return jnp.transpose(out, (1, 0, 2)), w.reshape(Lq, H, B, B)


def init_params(key, embed_dim):
    ks = jax.random.split(key, 8)
    s = 1.0 / math.sqrt(embed_dim)

    def u(k, shape):
        return jax.random.uniform(k, shape, jnp.float32, -s, s)

    wq, bq = u(ks[0], (embed_dim, embed_dim)), u(ks[1], (embed_dim,))
    wk, bk = u(ks[2], (embed_dim, embed_dim)), u(ks[3], (embed_dim,))
    wv, bv = u(ks[4], (embed_dim, embed_dim)), u(ks[5], (embed_dim,))
    wo, bo = u(ks[6], (embed_dim, embed_dim)), u(ks[7], (embed_dim,))
    return (wq, bq, wk, bk, wv, bv, wo, bo)


if __name__ == "__main__":
    L, B, E, H = 8, 2, 32, 4  # seq=8, batch=2, embed_dim=32, num_heads=4

    root = jax.random.PRNGKey(0)
    kq, kk, kv, kp = jax.random.split(root, 4)
    query = jax.random.normal(kq, (L, B, E), jnp.float32)
    key_t = jax.random.normal(kk, (L, B, E), jnp.float32)
    value = jax.random.normal(kv, (L, B, E), jnp.float32)
    params = init_params(kp, E)

    out, attn_w = multi_head_attention(query, key_t, value, params, H)
    out, attn_w = jax.block_until_ready((out, attn_w))

    ref_out, ref_w = mha_reference(query, key_t, value, params, H)
    assert out.shape == (L, B, E) and attn_w.shape == (L, H, B, B)
    assert jnp.allclose(out, ref_out, atol=1e-4, rtol=1e-4)
    assert jnp.allclose(attn_w, ref_w, atol=1e-5, rtol=1e-5)

    print("KERNEL_OK")
</pallas_src>

<mosaic_0001>
module attributes {stable_mosaic.version = 11 : i64} {
  func.func @_mha_fused_kernel(%arg0: memref<2x8x32xf32, #tpu.memory_space<vmem>>, %arg1: memref<2x8x32xf32, #tpu.memory_space<vmem>>, %arg2: memref<2x8x32xf32, #tpu.memory_space<vmem>>, %arg3: memref<32x32xf32, #tpu.memory_space<vmem>>, %arg4: memref<1x32xf32, #tpu.memory_space<vmem>>, %arg5: memref<32x32xf32, #tpu.memory_space<vmem>>, %arg6: memref<1x32xf32, #tpu.memory_space<vmem>>, %arg7: memref<32x32xf32, #tpu.memory_space<vmem>>, %arg8: memref<1x32xf32, #tpu.memory_space<vmem>>, %arg9: memref<32x32xf32, #tpu.memory_space<vmem>>, %arg10: memref<1x32xf32, #tpu.memory_space<vmem>>, %arg11: memref<2x8x32xf32, #tpu.memory_space<vmem>>, %arg12: memref<2x2x8x4xf32, #tpu.memory_space<vmem>>) attributes {dimension_semantics = [], scalar_prefetch = 0 : i64, scratch_operands = 0 : i64, tpu.core_type = #tpu.core_type<tc>} {
    %c0 = arith.constant 0 : index
    %c0_0 = arith.constant 0 : index
    %0 = vector.load %arg3[%c0, %c0_0] : memref<32x32xf32, #tpu.memory_space<vmem>>, vector<32x32xf32>
    %c0_1 = arith.constant 0 : index
    %c0_2 = arith.constant 0 : index
    %1 = vector.load %arg5[%c0_1, %c0_2] : memref<32x32xf32, #tpu.memory_space<vmem>>, vector<32x32xf32>
    %c0_3 = arith.constant 0 : index
    %c0_4 = arith.constant 0 : index
    %2 = vector.load %arg7[%c0_3, %c0_4] : memref<32x32xf32, #tpu.memory_space<vmem>>, vector<32x32xf32>
    %c0_5 = arith.constant 0 : index
    %c0_6 = arith.constant 0 : index
    %3 = vector.load %arg9[%c0_5, %c0_6] : memref<32x32xf32, #tpu.memory_space<vmem>>, vector<32x32xf32>
    %c0_7 = arith.constant 0 : index
    %c0_8 = arith.constant 0 : index
    %4 = vector.load %arg4[%c0_7, %c0_8] : memref<1x32xf32, #tpu.memory_space<vmem>>, vector<1x32xf32>
    %c0_9 = arith.constant 0 : index
    %c0_10 = arith.constant 0 : index
    %5 = vector.load %arg6[%c0_9, %c0_10] : memref<1x32xf32, #tpu.memory_space<vmem>>, vector<1x32xf32>
    %c0_11 = arith.constant 0 : index
    %c0_12 = arith.constant 0 : index
    %6 = vector.load %arg8[%c0_11, %c0_12] : memref<1x32xf32, #tpu.memory_space<vmem>>, vector<1x32xf32>
    %c0_13 = arith.constant 0 : index
    %c0_14 = arith.constant 0 : index
    %7 = vector.load %arg10[%c0_13, %c0_14] : memref<1x32xf32, #tpu.memory_space<vmem>>, vector<1x32xf32>
    %8 = tpu.iota {dimensions = array<i32: 0>} : vector<32x4xi32>
    %9 = tpu.iota {dimensions = array<i32: 1>} : vector<32x4xi32>
    %c8_i32 = arith.constant 8 : i32
    %10 = vector.broadcast %c8_i32 : i32 to vector<32x4xi32>
    %11 = arith.muli %9, %10 : vector<32x4xi32>
    %12 = arith.cmpi sge, %8, %11 : vector<32x4xi32>
    %c8_i32_15 = arith.constant 8 : i32
    %13 = vector.broadcast %c8_i32_15 : i32 to vector<32x4xi32>
    %14 = arith.addi %11, %13 : vector<32x4xi32>
    %15 = arith.cmpi slt, %8, %14 : vector<32x4xi32>
    %16 = arith.andi %12, %15 : vector<32x4xi1>
    %17 = arith.extui %16 : vector<32x4xi1> to vector<32x4xi32>
    %18 = arith.sitofp %17 : vector<32x4xi32> to vector<32x4xf32>
    %c0_16 = arith.constant 0 : index
    %c0_17 = arith.constant 0 : index
    %c0_18 = arith.constant 0 : index
    %19 = vector.load %arg0[%c0_16, %c0_17, %c0_18] : memref<2x8x32xf32, #tpu.memory_space<vmem>>, vector<1x8x32xf32>
    %20 = vector.shape_cast %19 : vector<1x8x32xf32> to vector<8x32xf32>
    %cst = arith.constant dense<0.000000e+00> : vector<8x32xf32>
    %21 = tpu.matmul %20, %0, %cst {dimension_numbers = #tpu.dot_dimension_numbers<[1], [1], [0], [0], [0, 0, 1, 0], [], []>} : vector<8x32xf32>, vector<32x32xf32>, vector<8x32xf32> -> vector<8x32xf32>
    %22 = vector.broadcast %4 : vector<1x32xf32> to vector<8x32xf32>
    %23 = arith.addf %21, %22 : vector<8x32xf32>
    %c1 = arith.constant 1 : index
    %c0_19 = arith.constant 0 : index
    %c0_20 = arith.constant 0 : index
    %24 = vector.load %arg0[%c1, %c0_19, %c0_20] : memref<2x8x32xf32, #tpu.memory_space<vmem>>, vector<1x8x32xf32>
    %25 = vector.shape_cast %24 : vector<1x8x32xf32> to vector<8x32xf32>
    %cst_21 = arith.constant dense<0.000000e+00> : vector<8x32xf32>
    %26 = tpu.matmul %25, %0, %cst_21 {dimension_numbers = #tpu.dot_dimension_numbers<[1], [1], [0], [0], [0, 0, 1, 0], [], []>} : vector<8x32xf32>, vector<32x32xf32>, vector<8x32xf32> -> vector<8x32xf32>
    %27 = vector.broadcast %4 : vector<1x32xf32> to vector<8x32xf32>
    %28 = arith.addf %26, %27 : vector<8x32xf32>
    %c0_22 = arith.constant 0 : index
    %c0_23 = arith.constant 0 : index
    %c0_24 = arith.constant 0 : index
    %29 = vector.load %arg1[%c0_22, %c0_23, %c0_24] : memref<2x8x32xf32, #tpu.memory_space<vmem>>, vector<1x8x32xf32>
    %30 = vector.shape_cast %29 : vector<1x8x32xf32> to vector<8x32xf32>
    %cst_25 = arith.constant dense<0.000000e+00> : vector<8x32xf32>
    %31 = tpu.matmul %30, %1, %cst_25 {dimension_numbers = #tpu.dot_dimension_numbers<[1], [1], [0], [0], [0, 0, 1, 0], [], []>} : vector<8x32xf32>, vector<32x32xf32>, vector<8x32xf32> -> vector<8x32xf32>
    %32 = vector.broadcast %5 : vector<1x32xf32> to vector<8x32xf32>
    %33 = arith.addf %31, %32 : vector<8x32xf32>
    %c1_26 = arith.constant 1 : index
    %c0_27 = arith.constant 0 : index
    %c0_28 = arith.constant 0 : index
    %34 = vector.load %arg1[%c1_26, %c0_27, %c0_28] : memref<2x8x32xf32, #tpu.memory_space<vmem>>, vector<1x8x32xf32>
    %35 = vector.shape_cast %34 : vector<1x8x32xf32> to vector<8x32xf32>
    %cst_29 = arith.constant dense<0.000000e+00> : vector<8x32xf32>
    %36 = tpu.matmul %35, %1, %cst_29 {dimension_numbers = #tpu.dot_dimension_numbers<[1], [1], [0], [0], [0, 0, 1, 0], [], []>} : vector<8x32xf32>, vector<32x32xf32>, vector<8x32xf32> -> vector<8x32xf32>
    %37 = vector.broadcast %5 : vector<1x32xf32> to vector<8x32xf32>
    %38 = arith.addf %36, %37 : vector<8x32xf32>
    %c0_30 = arith.constant 0 : index
    %c0_31 = arith.constant 0 : index
    %c0_32 = arith.constant 0 : index
    %39 = vector.load %arg2[%c0_30, %c0_31, %c0_32] : memref<2x8x32xf32, #tpu.memory_space<vmem>>, vector<1x8x32xf32>
    %40 = vector.shape_cast %39 : vector<1x8x32xf32> to vector<8x32xf32>
    %cst_33 = arith.constant dense<0.000000e+00> : vector<8x32xf32>
    %41 = tpu.matmul %40, %2, %cst_33 {dimension_numbers = #tpu.dot_dimension_numbers<[1], [1], [0], [0], [0, 0, 1, 0], [], []>} : vector<8x32xf32>, vector<32x32xf32>, vector<8x32xf32> -> vector<8x32xf32>
    %42 = vector.broadcast %6 : vector<1x32xf32> to vector<8x32xf32>
    %43 = arith.addf %41, %42 : vector<8x32xf32>
    %c1_34 = arith.constant 1 : index
    %c0_35 = arith.constant 0 : index
    %c0_36 = arith.constant 0 : index
    %44 = vector.load %arg2[%c1_34, %c0_35, %c0_36] : memref<2x8x32xf32, #tpu.memory_space<vmem>>, vector<1x8x32xf32>
    %45 = vector.shape_cast %44 : vector<1x8x32xf32> to vector<8x32xf32>
    %cst_37 = arith.constant dense<0.000000e+00> : vector<8x32xf32>
    %46 = tpu.matmul %45, %2, %cst_37 {dimension_numbers = #tpu.dot_dimension_numbers<[1], [1], [0], [0], [0, 0, 1, 0], [], []>} : vector<8x32xf32>, vector<32x32xf32>, vector<8x32xf32> -> vector<8x32xf32>
    %47 = vector.broadcast %6 : vector<1x32xf32> to vector<8x32xf32>
    %48 = arith.addf %46, %47 : vector<8x32xf32>
    %49 = arith.mulf %23, %33 : vector<8x32xf32>
    %cst_38 = arith.constant dense<0.000000e+00> : vector<8x4xf32>
    %50 = tpu.matmul %49, %18, %cst_38 {dimension_numbers = #tpu.dot_dimension_numbers<[1], [0], [0], [1], [0, 0, 1, 1], [], []>} : vector<8x32xf32>, vector<32x4xf32>, vector<8x4xf32> -> vector<8x4xf32>
    %cst_39 = arith.constant 0.353553385 : f32
    %51 = vector.broadcast %cst_39 : f32 to vector<8x4xf32>
    %52 = arith.mulf %50, %51 : vector<8x4xf32>
    %53 = arith.mulf %23, %38 : vector<8x32xf32>
    %cst_40 = arith.constant dense<0.000000e+00> : vector<8x4xf32>
    %54 = tpu.matmul %53, %18, %cst_40 {dimension_numbers = #tpu.dot_dimension_numbers<[1], [0], [0], [1], [0, 0, 1, 1], [], []>} : vector<8x32xf32>, vector<32x4xf32>, vector<8x4xf32> -> vector<8x4xf32>
    %cst_41 = arith.constant 0.353553385 : f32
    %55 = vector.broadcast %cst_41 : f32 to vector<8x4xf32>
    %56 = arith.mulf %54, %55 : vector<8x4xf32>
    %57 = arith.mulf %28, %33 : vector<8x32xf32>
    %cst_42 = arith.constant dense<0.000000e+00> : vector<8x4xf32>
    %58 = tpu.matmul %57, %18, %cst_42 {dimension_numbers = #tpu.dot_dimension_numbers<[1], [0], [0], [1], [0, 0, 1, 1], [], []>} : vector<8x32xf32>, vector<32x4xf32>, vector<8x4xf32> -> vector<8x4xf32>
    %cst_43 = arith.constant 0.353553385 : f32
    %59 = vector.broadcast %cst_43 : f32 to vector<8x4xf32>
    %60 = arith.mulf %58, %59 : vector<8x4xf32>
    %61 = arith.mulf %28, %38 : vector<8x32xf32>
    %cst_44 = arith.constant dense<0.000000e+00> : vector<8x4xf32>
    %62 = tpu.matmul %61, %18, %cst_44 {dimension_numbers = #tpu.dot_dimension_numbers<[1], [0], [0], [1], [0, 0, 1, 1], [], []>} : vector<8x32xf32>, vector<32x4xf32>, vector<8x4xf32> -> vector<8x4xf32>
    %cst_45 = arith.constant 0.353553385 : f32
    %63 = vector.broadcast %cst_45 : f32 to vector<8x4xf32>
    %64 = arith.mulf %62, %63 : vector<8x4xf32>
    %65 = arith.maximumf %52, %56 : vector<8x4xf32>
    %66 = arith.subf %52, %65 : vector<8x4xf32>
    %67 = math.exp %66 : vector<8x4xf32>
    %68 = arith.subf %56, %65 : vector<8x4xf32>
    %69 = math.exp %68 : vector<8x4xf32>
    %70 = arith.addf %67, %69 : vector<8x4xf32>
    %71 = tpu.reciprocal %70 : vector<8x4xf32> -> vector<8x4xf32>
    %72 = arith.mulf %67, %71 : vector<8x4xf32>
    %73 = arith.mulf %69, %71 : vector<8x4xf32>
    %cst_46 = arith.constant dense<0.000000e+00> : vector<8x32xf32>
    %74 = tpu.matmul %72, %18, %cst_46 {dimension_numbers = #tpu.dot_dimension_numbers<[1], [1], [0], [0], [0, 0, 1, 0], [], []>} : vector<8x4xf32>, vector<32x4xf32>, vector<8x32xf32> -> vector<8x32xf32>
    %75 = arith.mulf %74, %43 : vector<8x32xf32>
    %cst_47 = arith.constant dense<0.000000e+00> : vector<8x32xf32>
    %76 = tpu.matmul %73, %18, %cst_47 {dimension_numbers = #tpu.dot_dimension_numbers<[1], [1], [0], [0], [0, 0, 1, 0], [], []>} : vector<8x4xf32>, vector<32x4xf32>, vector<8x32xf32> -> vector<8x32xf32>
    %77 = arith.mulf %76, %48 : vector<8x32xf32>
    %78 = arith.addf %75, %77 : vector<8x32xf32>
    %cst_48 = arith.constant dense<0.000000e+00> : vector<8x32xf32>
    %79 = tpu.matmul %78, %3, %cst_48 {dimension_numbers = #tpu.dot_dimension_numbers<[1], [1], [0], [0], [0, 0, 1, 0], [], []>} : vector<8x32xf32>, vector<32x32xf32>, vector<8x32xf32> -> vector<8x32xf32>
    %80 = vector.broadcast %7 : vector<1x32xf32> to vector<8x32xf32>
    %81 = arith.addf %79, %80 : vector<8x32xf32>
    %c0_49 = arith.constant 0 : index
    %c0_50 = arith.constant 0 : index
    %c0_51 = arith.constant 0 : index
    %82 = vector.load %arg11[%c0_49, %c0_50, %c0_51] : memref<2x8x32xf32, #tpu.memory_space<vmem>>, vector<1x8x32xf32>
    %83 = vector.shape_cast %82 : vector<1x8x32xf32> to vector<8x32xf32>
    %84 = vector.shape_cast %81 : vector<8x32xf32> to vector<1x8x32xf32>
    tpu.vector_store %arg11[%c0_49, %c0_50, %c0_51], %84 {strides = array<i32>} : memref<2x8x32xf32, #tpu.memory_space<vmem>>, vector<1x8x32xf32>,
    %c0_52 = arith.constant 0 : index
    %c0_53 = arith.constant 0 : index
    %c0_54 = arith.constant 0 : index
    %c0_55 = arith.constant 0 : index
    %85 = vector.load %arg12[%c0_52, %c0_53, %c0_54, %c0_55] : memref<2x2x8x4xf32, #tpu.memory_space<vmem>>, vector<1x1x8x4xf32>
    %86 = vector.shape_cast %85 : vector<1x1x8x4xf32> to vector<8x4xf32>
    %87 = vector.shape_cast %72 : vector<8x4xf32> to vector<1x1x8x4xf32>
    tpu.vector_store %arg12[%c0_52, %c0_53, %c0_54, %c0_55], %87 {strides = array<i32>} : memref<2x2x8x4xf32, #tpu.memory_space<vmem>>, vector<1x1x8x4xf32>,
    %c0_56 = arith.constant 0 : index
    %c1_57 = arith.constant 1 : index
    %c0_58 = arith.constant 0 : index
    %c0_59 = arith.constant 0 : index
    %88 = vector.load %arg12[%c0_56, %c1_57, %c0_58, %c0_59] : memref<2x2x8x4xf32, #tpu.memory_space<vmem>>, vector<1x1x8x4xf32>
    %89 = vector.shape_cast %88 : vector<1x1x8x4xf32> to vector<8x4xf32>
    %90 = vector.shape_cast %73 : vector<8x4xf32> to vector<1x1x8x4xf32>
    tpu.vector_store %arg12[%c0_56, %c1_57, %c0_58, %c0_59], %90 {strides = array<i32>} : memref<2x2x8x4xf32, #tpu.memory_space<vmem>>, vector<1x1x8x4xf32>,
    %91 = arith.maximumf %60, %64 : vector<8x4xf32>
    %92 = arith.subf %60, %91 : vector<8x4xf32>
    %93 = math.exp %92 : vector<8x4xf32>
    %94 = arith.subf %64, %91 : vector<8x4xf32>
    %95 = math.exp %94 : vector<8x4xf32>
    %96 = arith.addf %93, %95 : vector<8x4xf32>
    %97 = tpu.reciprocal %96 : vector<8x4xf32> -> vector<8x4xf32>
    %98 = arith.mulf %93, %97 : vector<8x4xf32>
    %99 = arith.mulf %95, %97 : vector<8x4xf32>
    %cst_60 = arith.constant dense<0.000000e+00> : vector<8x32xf32>
    %100 = tpu.matmul %98, %18, %cst_60 {dimension_numbers = #tpu.dot_dimension_numbers<[1], [1], [0], [0], [0, 0, 1, 0], [], []>} : vector<8x4xf32>, vector<32x4xf32>, vector<8x32xf32> -> vector<8x32xf32>
    %101 = arith.mulf %100, %43 : vector<8x32xf32>
    %cst_61 = arith.constant dense<0.000000e+00> : vector<8x32xf32>
    %102 = tpu.matmul %99, %18, %cst_61 {dimension_numbers = #tpu.dot_dimension_numbers<[1], [1], [0], [0], [0, 0, 1, 0], [], []>} : vector<8x4xf32>, vector<32x4xf32>, vector<8x32xf32> -> vector<8x32xf32>
    %103 = arith.mulf %102, %48 : vector<8x32xf32>
    %104 = arith.addf %101, %103 : vector<8x32xf32>
    %cst_62 = arith.constant dense<0.000000e+00> : vector<8x32xf32>
    %105 = tpu.matmul %104, %3, %cst_62 {dimension_numbers = #tpu.dot_dimension_numbers<[1], [1], [0], [0], [0, 0, 1, 0], [], []>} : vector<8x32xf32>, vector<32x32xf32>, vector<8x32xf32> -> vector<8x32xf32>
    %106 = vector.broadcast %7 : vector<1x32xf32> to vector<8x32xf32>
    %107 = arith.addf %105, %106 : vector<8x32xf32>
    %c1_63 = arith.constant 1 : index
    %c0_64 = arith.constant 0 : index
    %c0_65 = arith.constant 0 : index
    %108 = vector.load %arg11[%c1_63, %c0_64, %c0_65] : memref<2x8x32xf32, #tpu.memory_space<vmem>>, vector<1x8x32xf32>
    %109 = vector.shape_cast %108 : vector<1x8x32xf32> to vector<8x32xf32>
    %110 = vector.shape_cast %107 : vector<8x32xf32> to vector<1x8x32xf32>
    tpu.vector_store %arg11[%c1_63, %c0_64, %c0_65], %110 {strides = array<i32>} : memref<2x8x32xf32, #tpu.memory_space<vmem>>, vector<1x8x32xf32>,
    %c1_66 = arith.constant 1 : index
    %c0_67 = arith.constant 0 : index
    %c0_68 = arith.constant 0 : index
    %c0_69 = arith.constant 0 : index
    %111 = vector.load %arg12[%c1_66, %c0_67, %c0_68, %c0_69] : memref<2x2x8x4xf32, #tpu.memory_space<vmem>>, vector<1x1x8x4xf32>
    %112 = vector.shape_cast %111 : vector<1x1x8x4xf32> to vector<8x4xf32>
    %113 = vector.shape_cast %98 : vector<8x4xf32> to vector<1x1x8x4xf32>
    tpu.vector_store %arg12[%c1_66, %c0_67, %c0_68, %c0_69], %113 {strides = array<i32>} : memref<2x2x8x4xf32, #tpu.memory_space<vmem>>, vector<1x1x8x4xf32>,
    %c1_70 = arith.constant 1 : index
    %c1_71 = arith.constant 1 : index
    %c0_72 = arith.constant 0 : index
    %c0_73 = arith.constant 0 : index
    %114 = vector.load %arg12[%c1_70, %c1_71, %c0_72, %c0_73] : memref<2x2x8x4xf32, #tpu.memory_space<vmem>>, vector<1x1x8x4xf32>
    %115 = vector.shape_cast %114 : vector<1x1x8x4xf32> to vector<8x4xf32>
    %116 = vector.shape_cast %99 : vector<8x4xf32> to vector<1x1x8x4xf32>
    tpu.vector_store %arg12[%c1_70, %c1_71, %c0_72, %c0_73], %116 {strides = array<i32>} : memref<2x2x8x4xf32, #tpu.memory_space<vmem>>, vector<1x1x8x4xf32>,
    return
  }
}

</mosaic_0001>

<bundles_post_ra>
// kernel: tpu_custom_call.1
= control target key start
LH: loop header
LB: loop body
LE: loop exit
PB: predicated region body
PF: predicated region fallthrough
CT: control target
= control target key end

     0   :  { %18 = vsyncpa [#allocation3], 0  ;;  %s2637_s0 = inlined_call_operand.hbm [shape: f32[2,8,32], index: 0, kind: input, shape index: {}]   ;;  %s2638_s1 = inlined_call_operand.hbm [shape: f32[2,8,32], index: 1, kind: input, shape index: {}]   ;;  %s2639_s2 = inlined_call_operand.hbm [shape: f32[2,8,32], index: 2, kind: input, shape index: {}]   ;;  %s2640_s3 = inlined_call_operand.hbm [shape: f32[32,32], index: 3, kind: input, shape index: {}]   ;;  %s2641_s4 = inlined_call_operand.vmem [shape: f32[1,32], index: 4, kind: input, shape index: {}]   ;;  %s2642_s5 = inlined_call_operand.hbm [shape: f32[32,32], index: 5, kind: input, shape index: {}]   ;;  %s2643_s6 = inlined_call_operand.vmem [shape: f32[1,32], index: 6, kind: input, shape index: {}]   ;;  %s2644_s7 = inlined_call_operand.hbm [shape: f32[32,32], index: 7, kind: input, shape index: {}]   ;;  %s2645_s8 = inlined_call_operand.hbm [shape: f32[1,32], index: 8, kind: input, shape index: {}]   ;;  %s2646_s9 = inlined_call_operand.vmem [shape: f32[32,32], index: 9, kind: input, shape index: {}]   ;;  %s2647_s10 = inlined_call_operand.vmem [shape: f32[1,32], index: 10, kind: input, shape index: {}]   ;;  %s2648_s11 = inlined_call_operand.hbm [shape: f32[2,8,32], index: 11, kind: output, shape index: {0}]   ;;  %s2649_s12 = inlined_call_operand.vmem [shape: f32[2,2,8,4], index: 12, kind: output, shape index: {1}]  }
   0x1   :  { %19 = vsyncpa [#allocation6], 0 }
   0x2   :  { %20 = vsyncpa [#allocation9], 0 }
   0x3   :  { %21 = vsyncpa [#allocation12], 0 }
   0x4   :  { %22 = vsyncpa [#allocation4], 0  ;;  %s2195_s21 = smov [#allocation5]   ;;  %s2196_s23 = smov [#allocation8]  }
   0x5   :  { %s40_s22 = sshll.u32 %s2195_s21, 4  ;;  %s64_s24 = sshll.u32 %s2196_s23, 4  ;;  %s41_s22 = int_to_ptr.vmem [resolvable:$true] %s40_s22  ;;  %s2274_s24 = int_to_ptr.vmem [resolvable:$true] %s64_s24 }
   0x6   :  { %s2009_s27 = scalar_lea.hbm %s2638_s1, 256 }
   0x7   :  { %p2010_p0 = scmp.ne.s32.totalorder %s2638_s1, %s2009_s27  ;;  %p2013_p1 = scmp.lt.u32.totalorder %s2009_s27, %s2638_s1 }
   0x9   :  { %p2015_p2 = pnand %p2013_p1, %p2010_p0 }
   0xb   :  { %2018 = shalt.err (!%p2015_p2)
}
   0xc   :  { %s2019_s14 = scalar_lea.vmem %s41_s22, 256  ;;  %p2024_p4 = scmp.lt.s32.totalorder %s41_s22, %s41_s22 }
   0xd   :  { %p2020_p3 = scmp.ne.s32.totalorder %s41_s22, %s2019_s14  ;;  %p2025_p5 = scmp.lt.s32.totalorder %s2019_s14, %s2019_s14 }
   0xf   :  { %p2026_p6 = por %p2025_p5, %p2024_p4 }
  0x11   :  { %p2027_p7 = pnand %p2026_p6, %p2020_p3 }
  0x13   :  { %2030 = shalt.err (!%p2027_p7)
}
  0x14   :  { %s2197_s15 = smov 128   ;;  %s2198_s16 = smov 8  }
  0x15   :  { %46 = dma.hbm_to_vmem [thread:$0]  %s2638_s1, 256, %s41_s22, [#allocation6], %s2197_s15, %s2197_s15, %s2198_s16  }
  0x16   :  { %s2031_s21 = scalar_lea.hbm %s2640_s3, 512 }
  0x17   :  { %p2032_p8 = scmp.ne.s32.totalorder %s2640_s3, %s2031_s21  ;;  %p2035_p9 = scmp.lt.u32.totalorder %s2031_s21, %s2640_s3 }
  0x19   :  { %p2037_p10 = pnand %p2035_p9, %p2032_p8 }
  0x1b   :  { %2040 = shalt.err (!%p2037_p10)
}
  0x1c   :  { %s2041_s28 = scalar_lea.vmem %s2274_s24, 512  ;;  %p2046_p12 = scmp.lt.s32.totalorder %s2274_s24, %s2274_s24 }
  0x1d   :  { %p2042_p11 = scmp.ne.s32.totalorder %s2274_s24, %s2041_s28  ;;  %p2047_p13 = scmp.lt.s32.totalorder %s2041_s28, %s2041_s28 }
  0x1f   :  { %p2048_p0 = por %p2047_p13, %p2046_p12 }
  0x21   :  { %p2049_p1 = pnand %p2048_p0, %p2042_p11 }
  0x23   :  { %2052 = shalt.err (!%p2049_p1)
}
  0x24   :  { %70 = dma.hbm_to_vmem [thread:$0]  %s2640_s3, 512, %s2274_s24, [#allocation9], %s2197_s15, %s2197_s15, %s2198_s16  }
  0x25   :  { %s2199_s29 = smov [#allocation11]   ;;  %s2200_s13 = smov [#allocation2]  }
  0x26   :  { %s92_s30 = sshll.u32 %s2199_s29, 4  ;;  %s28_s14 = sshll.u32 %s2200_s13, 4  ;;  %s93_s30 = int_to_ptr.vmem [resolvable:$true] %s92_s30  ;;  %s2311_s14 = int_to_ptr.vmem [resolvable:$true] %s28_s14 }
  0x27   :  { %s2053_s19 = scalar_lea.hbm %s2644_s7, 512 }
  0x28   :  { %p2054_p2 = scmp.ne.s32.totalorder %s2644_s7, %s2053_s19  ;;  %p2057_p3 = scmp.lt.u32.totalorder %s2053_s19, %s2644_s7 }
  0x2a   :  { %p2059_p4 = pnand %p2057_p3, %p2054_p2 }
  0x2c   :  { %2062 = shalt.err (!%p2059_p4)
}
  0x2d   :  { %s2063_s3 = scalar_lea.vmem %s93_s30, 512  ;;  %p2068_p6 = scmp.lt.s32.totalorder %s93_s30, %s93_s30 }
  0x2e   :  { %p2064_p5 = scmp.ne.s32.totalorder %s93_s30, %s2063_s3  ;;  %p2069_p7 = scmp.lt.s32.totalorder %s2063_s3, %s2063_s3 }
  0x30   :  { %p2070_p8 = por %p2069_p7, %p2068_p6 }
  0x32   :  { %p2071_p9 = pnand %p2070_p8, %p2064_p5 }
  0x34   :  { %2074 = shalt.err (!%p2071_p9)
}
  0x35   :  { %98 = dma.hbm_to_vmem [thread:$0]  %s2644_s7, 512, %s93_s30, [#allocation12], %s2197_s15, %s2197_s15, %s2198_s16  }
  0x36   :  { %s2075_s1 = scalar_lea.hbm %s2637_s0, 256 }
  0x37   :  { %p2076_p10 = scmp.ne.s32.totalorder %s2637_s0, %s2075_s1  ;;  %p2079_p11 = scmp.lt.u32.totalorder %s2075_s1, %s2637_s0 }
  0x39   :  { %p2081_p12 = pnand %p2079_p11, %p2076_p10 }
  0x3b   :  { %2084 = shalt.err (!%p2081_p12)
}
  0x3c   :  { %s2085_s18 = scalar_lea.vmem %s2311_s14, 256  ;;  %p2090_p0 = scmp.lt.s32.totalorder %s2311_s14, %s2311_s14 }
  0x3d   :  { %p2086_p13 = scmp.ne.s32.totalorder %s2311_s14, %s2085_s18  ;;  %p2091_p1 = scmp.lt.s32.totalorder %s2085_s18, %s2085_s18 }
  0x3f   :  { %p2092_p2 = por %p2091_p1, %p2090_p0 }
  0x41   :  { %p2093_p3 = pnand %p2092_p2, %p2086_p13 }
  0x43   :  { %2096 = shalt.err (!%p2093_p3)
}
  0x44   :  { %34 = dma.hbm_to_vmem [thread:$0]  %s2637_s0, 256, %s2311_s14, [#allocation3], %s2197_s15, %s2197_s15, %s2198_s16  }
  0x45   :  { %s2201_s19 = smov [#allocation7]   ;;  %s2202_s21 = smov [#allocation10]  }
  0x46   :  { %s52_s20 = sshll.u32 %s2201_s19, 4  ;;  %s78_s23 = sshll.u32 %s2202_s21, 4  ;;  %s53_s20 = int_to_ptr.vmem [resolvable:$true] %s52_s20  ;;  %s2348_s23 = int_to_ptr.vmem [resolvable:$true] %s78_s23 }
  0x47   :  { %s2097_s24 = scalar_lea.hbm %s2639_s2, 256 }
  0x48   :  { %p2098_p4 = scmp.ne.s32.totalorder %s2639_s2, %s2097_s24  ;;  %p2101_p5 = scmp.lt.u32.totalorder %s2097_s24, %s2639_s2 }
  0x4a   :  { %p2103_p6 = pnand %p2101_p5, %p2098_p4 }
  0x4c   :  { %2106 = shalt.err (!%p2103_p6)
}
  0x4d   :  { %s2107_s0 = scalar_lea.vmem %s53_s20, 256  ;;  %p2112_p8 = scmp.lt.s32.totalorder %s53_s20, %s53_s20 }
  0x4e   :  { %p2108_p7 = scmp.ne.s32.totalorder %s53_s20, %s2107_s0  ;;  %p2113_p9 = scmp.lt.s32.totalorder %s2107_s0, %s2107_s0 }
  0x50   :  { %p2114_p10 = por %p2113_p9, %p2112_p8 }
  0x52   :  { %p2115_p11 = pnand %p2114_p10, %p2108_p7 }
  0x54   :  { %2118 = shalt.err (!%p2115_p11)
}
  0x55   :  { %58 = dma.hbm_to_vmem [thread:$0]  %s2639_s2, 256, %s53_s20, [#allocation6], %s2197_s15, %s2197_s15, %s2198_s16  }
  0x56   :  { %s2119_s17 = scalar_lea.hbm %s2642_s5, 512 }
  0x57   :  { %p2120_p12 = scmp.ne.s32.totalorder %s2642_s5, %s2119_s17  ;;  %p2123_p13 = scmp.lt.u32.totalorder %s2119_s17, %s2642_s5 }
  0x59   :  { %p2125_p0 = pnand %p2123_p13, %p2120_p12 }
  0x5b   :  { %2128 = shalt.err (!%p2125_p0)
}
  0x5c   :  { %s2129_s21 = scalar_lea.vmem %s2348_s23, 512  ;;  %p2134_p2 = scmp.lt.s32.totalorder %s2348_s23, %s2348_s23 }
  0x5d   :  { %p2130_p1 = scmp.ne.s32.totalorder %s2348_s23, %s2129_s21  ;;  %p2135_p3 = scmp.lt.s32.totalorder %s2129_s21, %s2129_s21 }
  0x5f   :  { %p2136_p4 = por %p2135_p3, %p2134_p2 }
  0x61   :  { %p2137_p5 = pnand %p2136_p4, %p2130_p1 }
  0x63   :  { %2140 = shalt.err (!%p2137_p5)
}
  0x64   :  { %84 = dma.hbm_to_vmem [thread:$0]  %s2642_s5, 512, %s2348_s23, [#allocation9], %s2197_s15, %s2197_s15, %s2198_s16  }
  0x65   :  { %s2203_s25 = smov [#allocation13]   ;;  %s2141_s27 = scalar_lea.hbm %s2645_s8, 16 }
  0x66   :  { %s105_s3 = sshll.u32 %s2203_s25, 4  ;;  %p2142_p6 = scmp.ne.s32.totalorder %s2645_s8, %s2141_s27  ;;  %s106_s3 = int_to_ptr.vmem [resolvable:$true] %s105_s3 }
  0x67   :  { %p2145_p7 = scmp.lt.u32.totalorder %s2141_s27, %s2645_s8 }
  0x69   :  { %p2147_p8 = pnand %p2145_p7, %p2142_p6 }
  0x6b   :  { %2150 = shalt.err (!%p2147_p8)
}
  0x6c   :  { %s2151_s22 = scalar_lea.vmem %s106_s3, 16  ;;  %s2155_s5 = scalar_lea.vmem %s106_s3, 32 }
  0x6d   :  { %p2152_p9 = scmp.ne.s32.totalorder %s106_s3, %s2151_s22  ;;  %p2156_p10 = scmp.lt.s32.totalorder %s106_s3, %s106_s3 }
  0x6e   :  { %p2157_p11 = scmp.lt.s32.totalorder %s2155_s5, %s2151_s22 }
  0x70   :  { %p2158_p12 = por %p2157_p11, %p2156_p10 }
  0x72   :  { %p2159_p13 = pnand %p2158_p12, %p2152_p9 }
  0x74   :  { %2162 = shalt.err (!%p2159_p13)
}
  0x75   :  { %108 = dma.hbm_to_vmem [thread:$0]  %s2645_s8, 16, %s106_s3, [#allocation12]  }
  0x76   :  { %2185 = dma.done.wait [#allocation3], 256  }
  0x77   :  { %2186 = vsyncadd [#allocation3], 4294967040 }
  0x78   :  { %2187 = dma.done.wait [#allocation6], 512  }
  0x79   :  { %2188 = vsyncadd [#allocation6], 4294966784 }
  0x7a   :  { %2189 = dma.done.wait [#allocation9], 1024  }
  0x7b   :  { %2190 = vsyncadd [#allocation9], 4294966272 }
  0x7c   :  { %2191 = dma.done.wait [#allocation12], 528  }
  0x7d   :  { %2192 = vsyncadd [#allocation12], 4294966768  ;;  %v2204_v0 = vmov 0.0|0.0   ;;  %vm2205_vm0 = vmmov 0   ;;  %v2206_v1 = vmov 0.0   ;;  %vm190_vm1 = vcmask 261120  }
  0x7e   :  { %1863 = vmatprep.subr.bf16.mxu0 %v2204_v0  ;;  %1871 = vmatprep.subr.bf16.mxu1 %v2204_v0  ;;  %v134_v2 = vld [vmem:[#allocation8] sm:$0xff]  ;;  %v135_v3 = vld [vmem:[#allocation8 + $0x8] sm:$0xff]  ;;  %vm2405_vm2 = vmpackc.low %vm190_vm1, %vm190_vm1  ;;  %v154_v24 = vlaneseq  ;;  %v2207_v38 = vmov 1.0|1.0   ;;  %s2208_s14 = smov [#allocation14]  }
  0x7f   :  { %1695 = vmatprep.mubr.msk.f32.mxu0 %vm2205_vm0, %v2206_v1  ;;  %1706 = vmatprep.mubr.msk.f32.mxu1 %vm2205_vm0, %v2206_v1  ;;  %v1864_v5 = vpack.c.bf16 %v135_v3, %v134_v2  ;;  %v136_v6 = vld [vmem:[#allocation8 + $0x10] sm:$0xff]  ;;  %v137_v7 = vld [vmem:[#allocation8 + $0x18] sm:$0xff]  ;;  %v138_v9 = vld [vmem:[#allocation10] sm:$0xff]  ;;  %s1497_s22 = sshll.u32 %s2208_s14, 4  ;;  %s1498_s22 = int_to_ptr.vmem [resolvable:$true] %s1497_s22 }
  0x80   :  { %v1868_v8 = vpack.c.bf16 %v137_v7, %v136_v6  ;;  %v139_v10 = vld [vmem:[#allocation10 + $0x8] sm:$0xff]  ;;  %v183_v11 = vld [vmem:[#allocation2] sm:$0xff]  ;;  %v277_v12 = vld [vmem:[#allocation2 + $0x8] sm:$0xff]  ;;  %v155_v26 = vshrl.u32 %v154_v24, 7  ;;  %v160_v27 = vand.u32 127, %v154_v24  ;;  %p2168_p1 = scmp.lt.s32.totalorder %s1498_s22, %s1498_s22 }
  0x81   :  { %1866 = vmatpush3.bf16.xpose.msk.msra.mxu0 %vm2405_vm2, %v1864_v5  ;;  %1874 = vmatpush3.bf16.xpose.msk.msra.mxu1 %vm2405_vm2, %v1864_v5  ;;  %v1880_v13 = vpack.c.bf16 %v139_v10, %v138_v9  ;;  %v140_v14 = vld [vmem:[#allocation10 + $0x10] sm:$0xff]  ;;  %v141_v15 = vld [vmem:[#allocation10 + $0x18] sm:$0xff]  ;;  %v142_v17 = vld [vmem:[#allocation11] sm:$0xff] }
  0x82   :  { %1867 = vmatprep.subr.bf16.mxu0 %v2204_v0  ;;  %1875 = vmatprep.subr.bf16.mxu1 %v2204_v0  ;;  %v1884_v16 = vpack.c.bf16 %v141_v15, %v140_v14  ;;  %v143_v18 = vld [vmem:[#allocation11 + $0x8] sm:$0xff]  ;;  %v351_v19 = vld [vmem:[#allocation5] sm:$0xff]  ;;  %v144_v22 = vld [vmem:[#allocation11 + $0x10] sm:$0xff]  ;;  %v156_v28 = vadd.s32 8, %v155_v26  ;;  %v161_v29 = vmul.u32 8, %v160_v27  ;;  %v157_v36 = vadd.s32 16, %v155_v26 }
  0x83   :  { %v444_v20 = vld [vmem:[#allocation5 + $0x8] sm:$0xff]  ;;  %v1896_v21 = vpack.c.bf16 %v143_v18, %v142_v17  ;;  %v145_v23 = vld [vmem:[#allocation11 + $0x18] sm:$0xff]  ;;  %v518_v31 = vld [vmem:[#allocation7] sm:$0xff]  ;;  %v158_v37 = vadd.s32 24, %v155_v26 }
  0x84   :  { %v1900_v25 = vpack.c.bf16 %v145_v23, %v144_v22  ;;  %vm162_vm3 = vcmp.ge.s32.totalorder %v155_v26, %v161_v29  ;;  %v166_v30 = vadd.s32 8, %v161_v29  ;;  %v611_v32 = vld [vmem:[#allocation7 + $0x8] sm:$0xff]  ;;  %vm163_vm4 = vcmp.ge.s32.totalorder %v156_v28, %v161_v29  ;;  %v1520_v48 = vld [vmem:[%s2641_s4] ss:$0 sm:$0xff] }
  0x85   :  { %vm164_vm10 = vcmp.ge.s32.totalorder %v157_v36, %v161_v29  ;;  %vm165_vm11 = vcmp.ge.s32.totalorder %v158_v37, %v161_v29  ;;  %v1531_v49 = vld [vmem:[%s2643_s6] ss:$0 sm:$0xff]  ;;  %v147_v35 = vld [vmem:[%s2646_s9 + $0x8] sm:$0xff] }
  0x86   :  { %vm167_vm5 = vcmp.lt.s32.totalorder %v155_v26, %v166_v30  ;;  %vm168_vm6 = vcmp.lt.s32.totalorder %v156_v28, %v166_v30  ;;  %vm169_vm12 = vcmp.lt.s32.totalorder %v157_v36, %v166_v30  ;;  %vm170_vm13 = vcmp.lt.s32.totalorder %v158_v37, %v166_v30 }
  0x87   :  { %vm171_vm7 = vmand %vm162_vm3, %vm167_vm5 }
  0x88   :  { %vm172_vm8 = vmand %vm163_vm4, %vm168_vm6  ;;  %v1516_v33 = vsel %vm171_vm7, 1.0, %v2206_v1  ;;  %vm996_vm4 = vcmask 31744  }
  0x89   :  { %1870 = vmatpush3.bf16.xpose.msk.msra.mxu0 %vm2405_vm2, %v1868_v8  ;;  %1878 = vmatpush3.bf16.xpose.msk.msra.mxu1 %vm2405_vm2, %v1868_v8  ;;  %v1517_v34 = vsel %vm172_vm8, 1.0, %v2206_v1  ;;  %vm2461_vm9 = vmpackc.low %vm172_vm8, %vm171_vm7 }
  0x8a   :  { %1879 = vmatprep.subr.bf16.mxu0 %v2204_v0  ;;  %1887 = vmatprep.subr.bf16.mxu1 %v2204_v0  ;;  %v2471_v39 = vpack.c.bf16 %v1517_v34, %v1516_v33  ;;  %vm173_vm14 = vmand %vm164_vm10, %vm169_vm12  ;;  %v146_v34 = vld [vmem:[%s2646_s9] sm:$0xff] }
  0x8b   :  { %vm174_vm15 = vmand %vm165_vm11, %vm170_vm13  ;;  %v1518_v41 = vsel %vm173_vm14, 1.0, %v2206_v1  ;;  %v1952_v40 = vpack.c.bf16 %v147_v35, %v146_v34 }
  0x8c   :  { %vm2477_vm3 = vmpackc.low %vm174_vm15, %vm173_vm14  ;;  %v1519_v42 = vsel %vm174_vm15, 1.0, %v2206_v1 }
  0x8d   :  { %v2489_v43 = vpack.c.bf16 %v1519_v42, %v1518_v41  ;;  %vm2527_vm5 = vmpackc.low %vm996_vm4, %vm996_vm4  ;;  %v148_v41 = vld [vmem:[%s2646_s9 + $0x10] sm:$0xff]  ;;  %v149_v42 = vld [vmem:[%s2646_s9 + $0x18] sm:$0xff] }
  0x90   :  { %1696 = vmatmul.mubr.msk.f32.vlgmr.msra.gmra.mrb[0].mxu0 %vm190_vm1, %v183_v11  ;;  %1707 = vmatmul.mubr.msk.f32.vlgmr.msra.gmra.mrb[0].mxu1 %vm190_vm1, %v277_v12 }
  0x91   :  { %1882 = vmatpush3.bf16.xpose.msk.msra.mxu0 %vm2405_vm2, %v1880_v13  ;;  %1890 = vmatpush3.bf16.xpose.msk.msra.mxu1 %vm2405_vm2, %v1880_v13 }
  0x92   :  { %1883 = vmatprep.subr.bf16.mxu0 %v2204_v0  ;;  %1891 = vmatprep.subr.bf16.mxu1 %v2204_v0 }
  0x93   :  { %1717 = vmatprep.mubr.msk.f32.mxu0 %vm2205_vm0, %v2206_v1  ;;  %1728 = vmatprep.mubr.msk.f32.mxu1 %vm2205_vm0, %v2206_v1 }
  0x99   :  { %1886 = vmatpush3.bf16.xpose.msk.msra.mxu0 %vm2405_vm2, %v1884_v16  ;;  %1894 = vmatpush3.bf16.xpose.msk.msra.mxu1 %vm2405_vm2, %v1884_v16 }
  0x9a   :  { %1895 = vmatprep.subr.bf16.mxu0 %v2204_v0  ;;  %1903 = vmatprep.subr.bf16.mxu1 %v2204_v0 }
  0xa0   :  { %1718 = vmatmul.mubr.msk.f32.vlgmr.msra.gmra.mrb[2].mxu0 %vm190_vm1, %v351_v19  ;;  %1729 = vmatmul.mubr.msk.f32.vlgmr.msra.gmra.mrb[2].mxu1 %vm190_vm1, %v444_v20 }
  0xa1   :  { %1898 = vmatpush3.bf16.xpose.msk.msra.mxu0 %vm2405_vm2, %v1896_v21  ;;  %1906 = vmatpush3.bf16.xpose.msk.msra.mxu1 %vm2405_vm2, %v1896_v21 }
  0xa2   :  { %1899 = vmatprep.subr.bf16.mxu0 %v2204_v0  ;;  %1907 = vmatprep.subr.bf16.mxu1 %v2204_v0 }
  0xa3   :  { %1739 = vmatprep.mubr.msk.f32.mxu0 %vm2205_vm0, %v2206_v1  ;;  %1750 = vmatprep.mubr.msk.f32.mxu1 %vm2205_vm0, %v2206_v1 }
  0xa9   :  { %1902 = vmatpush3.bf16.xpose.msk.msra.mxu0 %vm2405_vm2, %v1900_v25  ;;  %1910 = vmatpush3.bf16.xpose.msk.msra.mxu1 %vm2405_vm2, %v1900_v25 }
  0xaa   :  { %1911 = vmatprep.subr.bf16.mxu0 %v2204_v0  ;;  %1917 = vmatprep.subr.bf16.mxu1 %v2204_v0 }
  0xb0   :  { %1740 = vmatmul.mubr.msk.f32.vlgmr.msra.gmra.mrb[4].mxu0 %vm190_vm1, %v518_v31  ;;  %1751 = vmatmul.mubr.msk.f32.vlgmr.msra.gmra.mrb[4].mxu1 %vm190_vm1, %v611_v32 }
  0xb1   :  { %1761 = vmatprep.mubr.msk.f32.mxu0 %vm2205_vm0, %v2206_v1  ;;  %1772 = vmatprep.mubr.msk.f32.mxu1 %vm2205_vm0, %v2206_v1 }
  0xb2   :  { %1913 = vmatpush3.bf16.msk.msra.mxu0 %vm2461_vm9, %v2207_v38  ;;  %1919 = vmatpush3.bf16.msk.msra.mxu1 %vm2461_vm9, %v2207_v38 }
  0xb3   :  { %1914 = vmatprep.subr.bf16.mxu0 %v2204_v0  ;;  %1920 = vmatprep.subr.bf16.mxu1 %v2204_v0 }
  0xb6   :  { %1916 = vmatpush3.bf16.msk.msra.mxu0 %vm2477_vm3, %v2207_v38  ;;  %1922 = vmatpush3.bf16.msk.msra.mxu1 %vm2477_vm3, %v2207_v38 }
  0xb7   :  { %1923 = vmatprep.subr.bf16.mxu0 %v2204_v0  ;;  %1929 = vmatprep.subr.bf16.mxu1 %v2204_v0 }
 0x163   :  { %v272_v44 = vpop.f32.mrb[0].mxu0  ;;  %v347_v45 = vpop.f32.mrb[0].mxu1 }
 0x164   :  { %v1697_v46 = vpop.f32.mrb[1].mxu0  ;;  %v1708_v47 = vpop.f32.mrb[1].mxu1  ;;  %v273_v52 = vadd.f32 %v1520_v48, %v272_v44  ;;  %v348_v53 = vadd.f32 %v1520_v48, %v347_v45  ;;  %v1542_v48 = vld [vmem:[#allocation13] ss:$0 sm:$0xff] }
 0x165   :  { %v1956_v46 = vpack.c.bf16 %v149_v42, %v148_v41 }
 0x173   :  { %v439_v50 = vpop.f32.mrb[2].mxu0  ;;  %v514_v51 = vpop.f32.mrb[2].mxu1 }
 0x174   :  { %v440_v54 = vadd.f32 %v1531_v49, %v439_v50  ;;  %v515_v55 = vadd.f32 %v1531_v49, %v514_v51  ;;  %v1719_v56 = vpop.f32.mrb[3].mxu0  ;;  %v1730_v57 = vpop.f32.mrb[3].mxu1 }
 0x176   :  { %v685_v58 = vmul.f32 %v440_v54, %v273_v52  ;;  %v835_v59 = vmul.f32 %v440_v54, %v348_v53  ;;  %v760_v60 = vmul.f32 %v515_v55, %v273_v52  ;;  %v910_v61 = vmul.f32 %v515_v55, %v348_v53 }
 0x178   :  { %1762 = vmatmul.mubr.msk.f32.vlgmr.msra.gmra.mrb[6].mxu0 %vm190_vm1, %v685_v58  ;;  %1773 = vmatmul.mubr.msk.f32.vlgmr.msra.gmra.mrb[6].mxu1 %vm190_vm1, %v760_v60  ;;  %v1583_v60 = vld [vmem:[%s2647_s10] ss:$0 sm:$0xff]  ;;  %s2163_s10 = scalar_lea.vmem %s1498_s22, 256 }
 0x179   :  { %1925 = vmatpush3.bf16.msk.msra.mxu0 %vm2461_vm9, %v2207_v38  ;;  %1931 = vmatpush3.bf16.msk.msra.mxu1 %vm2461_vm9, %v2207_v38  ;;  %p2164_p0 = scmp.ne.s32.totalorder %s1498_s22, %s2163_s10  ;;  %p2169_p2 = scmp.lt.s32.totalorder %s2163_s10, %s2163_s10 }
 0x17a   :  { %1926 = vmatprep.subr.bf16.mxu0 %v2204_v0  ;;  %1932 = vmatprep.subr.bf16.mxu1 %v2204_v0 }
 0x17b   :  { %1783 = vmatprep.mubr.msk.f32.mxu0 %vm2205_vm0, %v2206_v1  ;;  %1794 = vmatprep.mubr.msk.f32.mxu1 %vm2205_vm0, %v2206_v1  ;;  %p2170_p3 = por %p2169_p2, %p2168_p1 }
 0x17d   :  { %1928 = vmatpush3.bf16.msk.msra.mxu0 %vm2477_vm3, %v2207_v38  ;;  %1934 = vmatpush3.bf16.msk.msra.mxu1 %vm2477_vm3, %v2207_v38  ;;  %p2171_p4 = pnand %p2170_p3, %p2164_p0 }
 0x17e   :  { %1943 = vmatprep.subr.bf16.mxu1 %v2204_v0  ;;  %1935 = vmatprep.subr.bf16.mxu0 %v2204_v0 }
 0x180   :  { %1784 = vmatmul.mubr.msk.f32.vlgmr.msra.gmra.mrb[8].mxu0 %vm190_vm1, %v835_v59  ;;  %1795 = vmatmul.mubr.msk.f32.vlgmr.msra.gmra.mrb[8].mxu1 %vm190_vm1, %v910_v61 }
 0x181   :  { %1805 = vmatprep.mubr.msk.f32.mxu0 %vm2205_vm0, %v2206_v1  ;;  %1816 = vmatprep.mubr.msk.f32.mxu1 %vm2205_vm0, %v2206_v1 }
 0x183   :  { %v2521_v62 = vpop.f32.mrb[4].mxu0  ;;  %v2523_v63 = vpop.f32.mrb[4].mxu1 }
 0x184   :  { %v1741_v2 = vpop.f32.mrb[5].mxu0  ;;  %v1752_v3 = vpop.f32.mrb[5].mxu1  ;;  %v607_v49 = vadd.f32 %v1542_v48, %v2521_v62  ;;  %v682_v50 = vadd.f32 %v1542_v48, %v2523_v63 }
 0x186   :  { %1946 = vmatpush3.bf16.xpose.msk.msra.mxu1 %vm2527_vm5, %v2471_v39  ;;  %1938 = vmatpush3.bf16.xpose.msk.msra.mxu0 %vm2527_vm5, %v2471_v39 }
 0x187   :  { %1947 = vmatprep.subr.bf16.mxu1 %v2204_v0  ;;  %1939 = vmatprep.subr.bf16.mxu0 %v2204_v0 }
 0x18e   :  { %1950 = vmatpush3.bf16.xpose.msk.msra.mxu1 %vm2527_vm5, %v2489_v43  ;;  %1942 = vmatpush3.bf16.xpose.msk.msra.mxu0 %vm2527_vm5, %v2489_v43 }
 0x18f   :  { %1959 = vmatprep.subr.bf16.mxu1 %v2204_v0  ;;  %1951 = vmatprep.subr.bf16.mxu0 %v2204_v0 }
 0x24b   :  { %v755_v6 = vpop.f32.mrb[6].mxu0  ;;  %v830_v7 = vpop.f32.mrb[6].mxu1 }
 0x24c   :  { %v759_v8 = vmul.f32 0.35355338, %v755_v6  ;;  %v834_v9 = vmul.f32 0.35355338, %v830_v7  ;;  %v1763_v10 = vpop.f32.mrb[7].mxu0  ;;  %v1774_v11 = vpop.f32.mrb[7].mxu1 }
 0x24e   :  { %v985_v12 = vmax.f32 %v759_v8, %v834_v9 }
 0x250   :  { %v986_v13 = vsub.f32 %v759_v8, %v985_v12  ;;  %v989_v14 = vsub.f32 %v834_v9, %v985_v12 }
 0x252   :  { %v987_v15 = vmul.f32 1.442695, %v986_v13  ;;  %v990_v16 = vmul.f32 1.442695, %v989_v14 }
 0x253   :  { %v905_v17 = vpop.f32.mrb[8].mxu0  ;;  %v980_v18 = vpop.f32.mrb[8].mxu1 }
 0x254   :  { %1997 = vpow2.f32 %v987_v15  ;;  %v909_v19 = vmul.f32 0.35355338, %v905_v17  ;;  %v984_v20 = vmul.f32 0.35355338, %v980_v18  ;;  %v1785_v21 = vpop.f32.mrb[9].mxu0  ;;  %v1796_v22 = vpop.f32.mrb[9].mxu1 }
 0x255   :  { %1999 = vpow2.f32 %v990_v16 }
 0x256   :  { %v1253_v23 = vmax.f32 %v909_v19, %v984_v20 }
 0x258   :  { %v1254_v24 = vsub.f32 %v909_v19, %v1253_v23  ;;  %v1257_v25 = vsub.f32 %v984_v20, %v1253_v23 }
 0x25a   :  { %v1255_v26 = vmul.f32 1.442695, %v1254_v24  ;;  %v1258_v27 = vmul.f32 1.442695, %v1257_v25 }
 0x25c   :  { %2001 = vpow2.f32 %v1255_v26 }
 0x25d   :  { %2003 = vpow2.f32 %v1258_v27 }
 0x25e   :  { %v1998_v28 = vpop.eup %1997 }
 0x25f   :  { %v2000_v29 = vpop.eup %1999 }
 0x260   :  { %v992_v30 = vadd.f32 %v2000_v29, %v1998_v28 }
 0x262   :  { %2005 = vrcp.f32 %v992_v30 }
 0x266   :  { %v2002_v31 = vpop.eup %2001 }
 0x267   :  { %v2004_v32 = vpop.eup %2003 }
 0x268   :  { %v1260_v33 = vadd.f32 %v2004_v32, %v2002_v31 }
 0x26a   :  { %2007 = vrcp.f32 %v1260_v33 }
 0x26c   :  { %v2006_v36 = vpop.eup %2005 }
 0x26d   :  { %v994_v37 = vmul.f32 %v2006_v36, %v1998_v28  ;;  %v995_v38 = vmul.f32 %v2006_v36, %v2000_v29 }
 0x26f   :  { %1806 = vmatmul.mubr.msk.f32.vlgmr.msra.gmra.mrb[10].mxu0 %vm996_vm4, %v994_v37  ;;  %1250 = vst.msk [vmem:[%s2649_s12] sm:$0xff] %vm996_vm4, %v994_v37  ;;  %1817 = vmatmul.mubr.msk.f32.vlgmr.msra.gmra.mrb[10].mxu1 %vm996_vm4, %v995_v38  ;;  %1589 = vst.msk [vmem:[%s2649_s12 + $0x8] sm:$0xff] %vm996_vm4, %v995_v38 }
 0x270   :  { %1962 = vmatpush3.bf16.xpose.msk.msra.mxu1 %vm2527_vm5, %v2471_v39  ;;  %1838 = vmatprep.mubr.msk.f32.mxu1 %vm2205_vm0, %v2206_v1 }
 0x271   :  { %1963 = vmatprep.subr.bf16.mxu1 %v2204_v0  ;;  %1954 = vmatpush3.bf16.xpose.msk.msra.mxu0 %vm2405_vm2, %v1952_v40 }
 0x272   :  { %1955 = vmatprep.subr.bf16.mxu0 %v2204_v0  ;;  %1827 = vmatprep.mubr.msk.f32.mxu0 %vm2205_vm0, %v2206_v1 }
 0x274   :  { %v2008_v44 = vpop.eup %2007 }
 0x275   :  { %v1262_v45 = vmul.f32 %v2008_v44, %v2002_v31  ;;  %v1263_v47 = vmul.f32 %v2008_v44, %v2004_v32 }
 0x277   :  { %1605 = vst.msk [vmem:[%s2649_s12 + $0x10] sm:$0xff] %vm996_vm4, %v1262_v45  ;;  %1606 = vst.msk [vmem:[%s2649_s12 + $0x18] sm:$0xff] %vm996_vm4, %v1263_v47 }
 0x278   :  { %1966 = vmatpush3.bf16.xpose.msk.msra.mxu1 %vm2527_vm5, %v2489_v43 }
 0x279   :  { %1958 = vmatpush3.bf16.xpose.msk.msra.mxu0 %vm2405_vm2, %v1956_v46  ;;  %1975 = vmatprep.subr.bf16.mxu1 %v2204_v0 }
 0x27a   :  { %1967 = vmatprep.subr.bf16.mxu0 %v2204_v0 }
 0x27f   :  { %1839 = vmatmul.mubr.msk.f32.vlgmr.msra.gmra.mrb[12].mxu1 %vm996_vm4, %v1262_v45 }
 0x280   :  { %1978 = vmatpush3.bf16.xpose.msk.msra.mxu1 %vm2405_vm2, %v1952_v40  ;;  %1860 = vmatprep.mubr.msk.f32.mxu1 %vm2205_vm0, %v2206_v1 }
 0x281   :  { %1979 = vmatprep.subr.bf16.mxu1 %v2204_v0 }
 0x288   :  { %1982 = vmatpush3.bf16.xpose.msk.msra.mxu1 %vm2405_vm2, %v1956_v46 }
 0x342   :  { %v1078_v51 = vpop.f32.mrb[10].mxu0  ;;  %v1152_v52 = vpop.f32.mrb[10].mxu1 }
 0x343   :  { %v1082_v53 = vmul.f32 %v1078_v51, %v607_v49  ;;  %v1156_v54 = vmul.f32 %v1152_v52, %v682_v50  ;;  %v1807_v55 = vpop.f32.mrb[11].mxu0  ;;  %v1818_v56 = vpop.f32.mrb[11].mxu1 }
 0x345   :  { %v1157_v57 = vadd.f32 %v1156_v54, %v1082_v53 }
 0x347   :  { %1828 = vmatmul.mubr.msk.f32.vlgmr.msra.gmra.mrb[12].mxu0 %vm190_vm1, %v1157_v57 }
 0x348   :  { %1970 = vmatpush3.bf16.xpose.msk.msra.mxu0 %vm2527_vm5, %v2471_v39  ;;  %1849 = vmatprep.mubr.msk.f32.mxu0 %vm2205_vm0, %v2206_v1 }
 0x349   :  { %1971 = vmatprep.subr.bf16.mxu0 %v2204_v0 }
 0x350   :  { %1974 = vmatpush3.bf16.xpose.msk.msra.mxu0 %vm2527_vm5, %v2489_v43 }
 0x352   :  { %v1333_v4 = vpop.f32.mrb[12].mxu1 }
 0x353   :  { %v1337_v58 = vmul.f32 %v1333_v4, %v607_v49  ;;  %v1840_v59 = vpop.f32.mrb[13].mxu1 }
 0x357   :  { %1850 = vmatmul.mubr.msk.f32.vlgmr.msra.gmra.mrb[14].mxu0 %vm996_vm4, %v1263_v47 }
 0x41a   :  { %v1245_v61 = vpop.f32.mrb[12].mxu0 }
 0x41b   :  { %v1246_v39 = vadd.f32 %v1583_v60, %v1245_v61  ;;  %v1829_v62 = vpop.f32.mrb[13].mxu0 }
 0x41d   :  { %1249 = vst.msk [vmem:[#allocation14] sm:$0xff] %vm190_vm1, %v1246_v39 }
 0x42a   :  { %v1407_v1 = vpop.f32.mrb[14].mxu0 }
 0x42b   :  { %v1411_v0 = vmul.f32 %v1407_v1, %v682_v50  ;;  %v1851_v63 = vpop.f32.mrb[15].mxu0 }
 0x42d   :  { %v1412_v2 = vadd.f32 %v1411_v0, %v1337_v58 }
 0x42f   :  { %1861 = vmatmul.mubr.msk.f32.vlgmr.msra.gmra.mrb[14].mxu1 %vm190_vm1, %v1412_v2 }
 0x502   :  { %v1482_v43 = vpop.f32.mrb[14].mxu1 }
 0x503   :  { %v1483_v3 = vadd.f32 %v1583_v60, %v1482_v43  ;;  %v1862_v5 = vpop.f32.mrb[15].mxu1 }
 0x505   :  { %1487 = vst.msk [vmem:[#allocation14 + $0x8] sm:$0xff] %vm190_vm1, %v1483_v3 }
 0x506   :  { %2174 = shalt.err (!%p2171_p4)
}
 0x507   :  { %s2175_s29 = scalar_lea.hbm %s2648_s11, 256 }
 0x508   :  { %p2176_p5 = scmp.ne.s32.totalorder %s2648_s11, %s2175_s29  ;;  %p2179_p6 = scmp.lt.u32.totalorder %s2175_s29, %s2648_s11 }
 0x50a   :  { %p2181_p7 = pnand %p2179_p6, %p2176_p5 }
 0x50c   :  { %2184 = shalt.err (!%p2181_p7)
}
 0x50d   :  { %1503 = dma.vmem_to_hbm [thread:$0]  %s1498_s22, 256, %s2648_s11, [#allocation4], %s2197_s15, %s2197_s15, %s2198_s16  }
 0x50e   :  { %2193 = dma.done.wait [#allocation4], 256  }
 0x50f   :  { %2194 = vsyncadd [#allocation4], 4294967040 }
 0x510   :  { %1511 = vsyncpa [#allocation3], 1 }
 0x511   :  { %1512 = vsyncpa [#allocation6], 1 }
 0x512   :  { %1513 = vsyncpa [#allocation9], 1 }
 0x513   :  { %1514 = vsyncpa [#allocation12], 1 }
 0x514   :  { %1515 = vsyncpa [#allocation4], 1 }

</bundles_post_ra>
